<compile_context>
chip_gen: v7x
topology: tpu7x:2x2x1
jax: 0.10.0
libtpu: 0.0.40
codegen_flags: <defaults>
</compile_context>

<pallas_src>
import functools
import math

import jax
import jax.numpy as jnp
from jax.experimental import pallas as pl
from jax.experimental.pallas import tpu as pltpu


def _round_up(x: int, m: int) -> int:
    return -(-x // m) * m


def _pick_out_tile(n_out_pad: int, bytes_per_out_col: int,
                   max_block_bytes: int = 6 << 20) -> int:
    """Pick a lane-aligned N_out tile that divides n_out_pad."""
    tno = 128
    for cand in (512, 256):
        if n_out_pad % cand == 0:
            tno = cand
            break
    # Keep >= 2 blocks along this parallel axis when possible (v7x: 2 TCs).
    while tno > 128 and n_out_pad // tno < 2:
        tno //= 2
    # Keep the streamed W^T / accumulator block small enough for the default
    # scoped VMEM limit with double buffering.
    while tno > 128 and tno * bytes_per_out_col > max_block_bytes:
        tno //= 2
    return tno


# ---------------------------------------------------------------------------
# Stage 1 (one-time, cached): densify sparse (index, weight) into dense W^T.
# ---------------------------------------------------------------------------
def _densify_kernel(conn_ref, w_ref, wt_ref, *, wpo: int):
    # wt_ref: (n_in, tno) block of W^T (N_in on sublanes, N_out on lanes).
    n_in, tno = wt_ref.shape
    row = jax.lax.broadcasted_iota(jnp.int32, (n_in, 1), 0)      # sublane iota only
    acc = jnp.zeros((n_in, tno), jnp.float32)
    for k in range(wpo):                                         # K tiny & static
        conn_k = conn_ref[k:k + 1, :]                            # (1, tno) int32
        w_k = w_ref[k:k + 1, :]                                  # (1, tno) f32
        # compare + select + add; duplicate indices accumulate correctly.
        acc = acc + jnp.where(row == conn_k, w_k, 0.0)
    wt_ref[...] = acc.astype(wt_ref.dtype)


def densify_weights_t(connections, weights, n_in, *, dtype=jnp.bfloat16):
    """Build dense W^T of shape (n_in, n_out_pad).

    connections/weights are layer parameters: call this once (at init / after
    a parameter update) and reuse the result for every forward.  Stale-cache
    hazard: re-run whenever connections or weights change.
    """
    n_out, wpo = connections.shape
    n_out_pad = _round_up(n_out, 128)

    # OOB indices would be UB in the CUDA kernel; clamp so the one-hot scatter
    # is deterministic.  Padded N_out columns carry zero weight.
    conn_t = jnp.zeros((wpo, n_out_pad), jnp.int32)
    conn_t = conn_t.at[:, :n_out].set(
        jnp.clip(connections.astype(jnp.int32), 0, n_in - 1).T)
    w_t = jnp.zeros((wpo, n_out_pad), jnp.float32)
    w_t = w_t.at[:, :n_out].set(weights.astype(jnp.float32).T)

    # f32 accumulator of shape (n_in, tno) dominates this kernel's footprint.
    tno = _pick_out_tile(n_out_pad, n_in * 4)
    grid = (n_out_pad // tno,)

    # TODO(synk): for very large N_in (>~16K) this full-extent K block should
    # be tiled; typical layer sizes fit comfortably.
    return pl.pallas_call(
        functools.partial(_densify_kernel, wpo=wpo),
        out_shape=jax.ShapeDtypeStruct((n_in, n_out_pad), dtype),
        grid=grid,
        in_specs=[pl.BlockSpec((wpo, tno), lambda j: (0, j)),
                  pl.BlockSpec((wpo, tno), lambda j: (0, j))],
        out_specs=pl.BlockSpec((n_in, tno), lambda j: (0, j)),
        compiler_params=pltpu.CompilerParams(
            dimension_semantics=("parallel",)),
    )(conn_t, w_t)


# ---------------------------------------------------------------------------
# Stage 2 (per call): single MXU matmul  out = x @ W^T, f32 accumulation.
# ---------------------------------------------------------------------------
def _matmul_kernel(x_ref, wt_ref, o_ref):
    # Cast x to the (cached) weight dtype inside the kernel — no wrapper-side
    # cast/pad pass over x in HBM.
    o_ref[...] = jnp.dot(x_ref[...].astype(wt_ref.dtype), wt_ref[...],
                         preferred_element_type=jnp.float32)


def positional_sparse_linear_2d(x, w_dense_t, out_height, out_width):
    """x: (B, in_h, in_w) f32, w_dense_t: cached (N_in, N_out_pad) dense W^T."""
    b, in_h, in_w = x.shape
    n_in = in_h * in_w
    n_in_w, n_out_pad = w_dense_t.shape
    assert n_in_w == n_in, "cached W^T does not match input spatial size"
    n_out = out_height * out_width
    assert n_out <= n_out_pad

    x_flat = x.reshape(b, n_in)            # stays f32; cast fused into kernel

    # Batch blocking: full-extent block (no padding, no extra HBM pass) for
    # the common small-B case; tile + pad only when the x block would be big.
    if b * n_in * 4 <= (8 << 20):
        tb, b_pad, x_in = b, b, x_flat
    else:
        tb = 256
        b_pad = _round_up(b, tb)
        x_in = jnp.zeros((b_pad, n_in), x_flat.dtype).at[:b].set(x_flat)

    wt_itemsize = jnp.dtype(w_dense_t.dtype).itemsize
    tno = _pick_out_tile(n_out_pad, n_in * wt_itemsize)
    grid = (b_pad // tb, n_out_pad // tno)

    cost = pl.CostEstimate(
        flops=2 * b_pad * n_in * n_out_pad,
        transcendentals=0,
        bytes_accessed=(b_pad * n_in * 4
                        + n_in * n_out_pad * wt_itemsize
                        + b_pad * n_out_pad * 4))

    out_pad = pl.pallas_call(
        _matmul_kernel,
        out_shape=jax.ShapeDtypeStruct((b_pad, n_out_pad), jnp.float32),
        grid=grid,
        in_specs=[pl.BlockSpec((tb, n_in), lambda i, j: (i, 0)),
                  pl.BlockSpec((n_in, tno), lambda i, j: (0, j))],
        out_specs=pl.BlockSpec((tb, tno), lambda i, j: (i, j)),
        compiler_params=pltpu.CompilerParams(
            dimension_semantics=("parallel", "parallel")),
        cost_estimate=cost,
    )(x_in, w_dense_t)

    return out_pad[:b, :n_out].reshape(b, out_height, out_width)


class PositionalSparseLinear2dTPU:
    """Caches the densified W^T once; per-call forward is a single matmul.

    compute_dtype=jnp.float32 is available as an accuracy knob (bf16 weight
    quantization is ~0.4% relative for short K=5 sums).
    """

    def __init__(self, connections, weights, in_height, in_width,
                 out_height, out_width, *, compute_dtype=jnp.bfloat16):
        self.in_height, self.in_width = in_height, in_width
        self.out_height, self.out_width = out_height, out_width
        self.n_in = in_height * in_width
        assert connections.shape[0] == out_height * out_width
        # NOTE: re-build (invalidate) w_dense_t whenever connections/weights
        # change, otherwise the forward silently uses stale parameters.
        self.w_dense_t = densify_weights_t(connections, weights, self.n_in,
                                           dtype=compute_dtype)

    def __call__(self, x):
        assert x.ndim == 3 and x.shape[1:] == (self.in_height, self.in_width)
        return positional_sparse_linear_2d(x, self.w_dense_t,
                                           self.out_height, self.out_width)


# ---------------------------------------------------------------------------
# References for validation.
# ---------------------------------------------------------------------------
def _reference_f32(x, connections, weights, out_h, out_w):
    b = x.shape[0]
    x_flat = x.reshape(b, -1)
    gathered = x_flat[:, connections]                  # (B, N_out, K)
    return (gathered * weights[None]).sum(-1).reshape(b, out_h, out_w)


def _reference_bf16(x, connections, weights, out_h, out_w):
    # Mirrors the kernel's quantization: scatter-add weights in f32, cast to
    # bf16, bf16 activations, f32 accumulation in the dot.
    b = x.shape[0]
    n_in = x.shape[1] * x.shape[2]
    n_out = connections.shape[0]
    x_flat = x.reshape(b, n_in)
    w_dense = jnp.zeros((n_out, n_in), jnp.float32)
    w_dense = w_dense.at[jnp.arange(n_out)[:, None], connections].add(weights)
    w_q = w_dense.astype(jnp.bfloat16).astype(jnp.float32)
    x_q = x_flat.astype(jnp.bfloat16).astype(jnp.float32)
    out = jnp.dot(x_q, w_q.T, precision=jax.lax.Precision.HIGHEST)
    return out.reshape(b, out_h, out_w)


if __name__ == "__main__":
    def run_case(key, b, in_h, in_w, out_h, out_w, wpo):
        n_in = in_h * in_w
        n_out = out_h * out_w
        k_x, k_conn, k_w = jax.random.split(key, 3)
        x = jax.random.normal(k_x, (b, in_h, in_w), jnp.float32)
        # TODO(synk): the module samples `connections` from a positional
        # multinomial (exp(-dist / position_influence)) at init time; uniform
        # random indices are used here — forward semantics depend only on the
        # index values, not on how they were drawn.
        connections = jax.random.randint(k_conn, (n_out, wpo), 0, n_in,
                                         dtype=jnp.int32)
        bound = 1.0 / math.sqrt(wpo)
        weights = jax.random.uniform(k_w, (n_out, wpo), jnp.float32,
                                     -bound, bound)

        layer = PositionalSparseLinear2dTPU(connections, weights,
                                            in_h, in_w, out_h, out_w)
        out = jax.block_until_ready(layer(x))
        out2 = jax.block_until_ready(layer(x))   # cached W^T: no re-densify
        assert out.shape == (b, out_h, out_w)
        assert bool(jnp.array_equal(out, out2))

        ref_q = _reference_bf16(x, connections, weights, out_h, out_w)
        ref_f = _reference_f32(x, connections, weights, out_h, out_w)
        err_q = float(jnp.max(jnp.abs(out - ref_q)))
        err_f = float(jnp.max(jnp.abs(out - ref_f)))
        # Tight check against a reference with matching bf16 quantization.
        assert jnp.allclose(out, ref_q, atol=1e-4, rtol=1e-4), (
            f"bf16-matched reference mismatch: max abs err = {err_q}")
        # Looser end-to-end check against the pure-f32 sparse reference
        # (bf16 operands -> expected small rounding differences).
        assert jnp.allclose(out, ref_f, atol=1e-1, rtol=0.0), (
            f"f32 reference mismatch: max abs err = {err_f}")

    key = jax.random.PRNGKey(0)
    k1, k2 = jax.random.split(key)
    # Small shape (single-tile grid, exercises N_out padding 64 -> 128 and the
    # unpadded full-extent N_in / batch blocks).
    run_case(k1, b=2, in_h=16, in_w=16, out_h=8, out_w=8, wpo=5)
    # Larger shape exercising multi-tile N_out grid (576 -> 640 pad, 5 lane
    # tiles) with an N_in (1600) that is not a multiple of 128 (full-extent
    # K block, no N_in padding, no reduction grid axis).
    run_case(k2, b=3, in_h=40, in_w=40, out_h=24, out_w=24, wpo=5)
    print("KERNEL_OK")
</pallas_src>

<mosaic_0001>
module attributes {stable_mosaic.version = 11 : i64} {
  func.func @_densify_kernel(%arg0: i32, %arg1: memref<5x128xi32, #tpu.memory_space<vmem>>, %arg2: memref<5x128xf32, #tpu.memory_space<vmem>>, %arg3: memref<256x128xbf16, #tpu.memory_space<vmem>>) attributes {dimension_semantics = [#tpu.dimension_semantics<parallel>], iteration_bounds = array<i64: 1>, scalar_prefetch = 0 : i64, scratch_operands = 0 : i64, tpu.core_type = #tpu.core_type<tc>, window_params = [{transform_indices = @transform_0, window_bounds = array<i64: 5, 128>}, {transform_indices = @transform_1, window_bounds = array<i64: 5, 128>}, {transform_indices = @transform_2, window_bounds = array<i64: 256, 128>}]} {
    %0 = tpu.iota {dimensions = array<i32: 0>} : vector<256x1xi32>
    %cst = arith.constant 0.000000e+00 : f32
    %1 = vector.broadcast %cst : f32 to vector<256x128xf32>
    %c0 = arith.constant 0 : index
    %c0_0 = arith.constant 0 : index
    %2 = vector.load %arg1[%c0, %c0_0] : memref<5x128xi32, #tpu.memory_space<vmem>>, vector<1x128xi32>
    %c0_1 = arith.constant 0 : index
    %c0_2 = arith.constant 0 : index
    %3 = vector.load %arg2[%c0_1, %c0_2] : memref<5x128xf32, #tpu.memory_space<vmem>>, vector<1x128xf32>
    %4 = vector.broadcast %0 : vector<256x1xi32> to vector<256x128xi32>
    %5 = vector.broadcast %2 : vector<1x128xi32> to vector<256x128xi32>
    %6 = arith.cmpi eq, %4, %5 : vector<256x128xi32>
    %cst_3 = arith.constant 0.000000e+00 : f32
    %7 = vector.shape_cast %3 : vector<1x128xf32> to vector<1x128xf32>
    %8 = vector.broadcast %7 : vector<1x128xf32> to vector<256x128xf32>
    %9 = vector.broadcast %cst_3 : f32 to vector<256x128xf32>
    %10 = arith.select %6, %8, %9 : vector<256x128xi1>, vector<256x128xf32>
    %11 = arith.addf %1, %10 : vector<256x128xf32>
    %c1 = arith.constant 1 : index
    %c0_4 = arith.constant 0 : index
    %12 = vector.load %arg1[%c1, %c0_4] : memref<5x128xi32, #tpu.memory_space<vmem>>, vector<1x128xi32>
    %c1_5 = arith.constant 1 : index
    %c0_6 = arith.constant 0 : index
    %13 = vector.load %arg2[%c1_5, %c0_6] : memref<5x128xf32, #tpu.memory_space<vmem>>, vector<1x128xf32>
    %14 = vector.broadcast %0 : vector<256x1xi32> to vector<256x128xi32>
    %15 = vector.broadcast %12 : vector<1x128xi32> to vector<256x128xi32>
    %16 = arith.cmpi eq, %14, %15 : vector<256x128xi32>
    %cst_7 = arith.constant 0.000000e+00 : f32
    %17 = vector.shape_cast %13 : vector<1x128xf32> to vector<1x128xf32>
    %18 = vector.broadcast %17 : vector<1x128xf32> to vector<256x128xf32>
    %19 = vector.broadcast %cst_7 : f32 to vector<256x128xf32>
    %20 = arith.select %16, %18, %19 : vector<256x128xi1>, vector<256x128xf32>
    %21 = arith.addf %11, %20 : vector<256x128xf32>
    %c2 = arith.constant 2 : index
    %c0_8 = arith.constant 0 : index
    %22 = vector.load %arg1[%c2, %c0_8] : memref<5x128xi32, #tpu.memory_space<vmem>>, vector<1x128xi32>
    %c2_9 = arith.constant 2 : index
    %c0_10 = arith.constant 0 : index
    %23 = vector.load %arg2[%c2_9, %c0_10] : memref<5x128xf32, #tpu.memory_space<vmem>>, vector<1x128xf32>
    %24 = vector.broadcast %0 : vector<256x1xi32> to vector<256x128xi32>
    %25 = vector.broadcast %22 : vector<1x128xi32> to vector<256x128xi32>
    %26 = arith.cmpi eq, %24, %25 : vector<256x128xi32>
    %cst_11 = arith.constant 0.000000e+00 : f32
    %27 = vector.shape_cast %23 : vector<1x128xf32> to vector<1x128xf32>
    %28 = vector.broadcast %27 : vector<1x128xf32> to vector<256x128xf32>
    %29 = vector.broadcast %cst_11 : f32 to vector<256x128xf32>
    %30 = arith.select %26, %28, %29 : vector<256x128xi1>, vector<256x128xf32>
    %31 = arith.addf %21, %30 : vector<256x128xf32>
    %c3 = arith.constant 3 : index
    %c0_12 = arith.constant 0 : index
    %32 = vector.load %arg1[%c3, %c0_12] : memref<5x128xi32, #tpu.memory_space<vmem>>, vector<1x128xi32>
    %c3_13 = arith.constant 3 : index
    %c0_14 = arith.constant 0 : index
    %33 = vector.load %arg2[%c3_13, %c0_14] : memref<5x128xf32, #tpu.memory_space<vmem>>, vector<1x128xf32>
    %34 = vector.broadcast %0 : vector<256x1xi32> to vector<256x128xi32>
    %35 = vector.broadcast %32 : vector<1x128xi32> to vector<256x128xi32>
    %36 = arith.cmpi eq, %34, %35 : vector<256x128xi32>
    %cst_15 = arith.constant 0.000000e+00 : f32
    %37 = vector.shape_cast %33 : vector<1x128xf32> to vector<1x128xf32>
    %38 = vector.broadcast %37 : vector<1x128xf32> to vector<256x128xf32>
    %39 = vector.broadcast %cst_15 : f32 to vector<256x128xf32>
    %40 = arith.select %36, %38, %39 : vector<256x128xi1>, vector<256x128xf32>
    %41 = arith.addf %31, %40 : vector<256x128xf32>
    %c4 = arith.constant 4 : index
    %c0_16 = arith.constant 0 : index
    %42 = vector.load %arg1[%c4, %c0_16] : memref<5x128xi32, #tpu.memory_space<vmem>>, vector<1x128xi32>
    %c4_17 = arith.constant 4 : index
    %c0_18 = arith.constant 0 : index
    %43 = vector.load %arg2[%c4_17, %c0_18] : memref<5x128xf32, #tpu.memory_space<vmem>>, vector<1x128xf32>
    %44 = vector.broadcast %0 : vector<256x1xi32> to vector<256x128xi32>
    %45 = vector.broadcast %42 : vector<1x128xi32> to vector<256x128xi32>
    %46 = arith.cmpi eq, %44, %45 : vector<256x128xi32>
    %cst_19 = arith.constant 0.000000e+00 : f32
    %47 = vector.shape_cast %43 : vector<1x128xf32> to vector<1x128xf32>
    %48 = vector.broadcast %47 : vector<1x128xf32> to vector<256x128xf32>
    %49 = vector.broadcast %cst_19 : f32 to vector<256x128xf32>
    %50 = arith.select %46, %48, %49 : vector<256x128xi1>, vector<256x128xf32>
    %51 = arith.addf %41, %50 : vector<256x128xf32>
    %52 = arith.truncf %51 : vector<256x128xf32> to vector<256x128xbf16>
    %c0_20 = arith.constant 0 : index
    %c0_21 = arith.constant 0 : index
    %53 = vector.load %arg3[%c0_20, %c0_21] : memref<256x128xbf16, #tpu.memory_space<vmem>>, vector<256x128xbf16>
    tpu.vector_store %arg3[%c0_20, %c0_21], %52 {strides = array<i32>} : memref<256x128xbf16, #tpu.memory_space<vmem>>, vector<256x128xbf16>,
    return
  }
  func.func @transform_0(%arg0: i32) -> (i32, i32) {
    %c0_i32 = arith.constant 0 : i32
    %c0_i32_0 = arith.constant 0 : i32
    return %c0_i32, %arg0 : i32, i32
  }
  func.func @transform_1(%arg0: i32) -> (i32, i32) {
    %c0_i32 = arith.constant 0 : i32
    %c0_i32_0 = arith.constant 0 : i32
    return %c0_i32, %arg0 : i32, i32
  }
  func.func @transform_2(%arg0: i32) -> (i32, i32) {
    %c0_i32 = arith.constant 0 : i32
    %c0_i32_0 = arith.constant 0 : i32
    return %c0_i32, %arg0 : i32, i32
  }
}

</mosaic_0001>

<bundles_post_ra>
// kernel: tpu_custom_call.1
= control target key start
LH: loop header
LB: loop body
LE: loop exit
PB: predicated region body
PF: predicated region fallthrough
CT: control target
= control target key end

     0   :  { %7 = vsyncpa [#allocation3], 0  ;;  %s1569_s0 = inlined_call_operand.hbm [shape: s32[5,128], index: 0, kind: input, shape index: {}]   ;;  %s1570_s1 = inlined_call_operand.hbm [shape: f32[5,128], index: 1, kind: input, shape index: {}]   ;;  %s1571_s2 = inlined_call_operand.hbm [shape: bf16[256,128], index: 2, kind: output, shape index: {}]  }
   0x1   :  { %8 = vsyncpa [#allocation6], 0 }
   0x2   :  { %9 = vsyncpa [#allocation4], 0  ;;  %s1023_s9 = smov [#allocation2]   ;;  %s1024_s11 = smov [#allocation5]  }
   0x3   :  { %s16_s10 = sshll.u32 %s1023_s9, 4  ;;  %s26_s12 = sshll.u32 %s1024_s11, 4  ;;  %s17_s10 = int_to_ptr.vmem [resolvable:$true] %s16_s10  ;;  %s27_s12 = int_to_ptr.vmem [resolvable:$true] %s26_s12 }
   0x4   :  { %s951_s15 = scalar_lea.hbm %s1569_s0, 128 }
   0x5   :  { %p952_p0 = scmp.ne.s32.totalorder %s1569_s0, %s951_s15  ;;  %p955_p1 = scmp.lt.u32.totalorder %s951_s15, %s1569_s0 }
   0x7   :  { %p957_p2 = pnand %p955_p1, %p952_p0 }
   0x9   :  { %960 = shalt.err (!%p957_p2)
}
   0xa   :  { %s961_s20 = scalar_lea.vmem %s17_s10, 128  ;;  %p966_p4 = scmp.lt.s32.totalorder %s17_s10, %s17_s10 }
   0xb   :  { %p962_p3 = scmp.ne.s32.totalorder %s17_s10, %s961_s20  ;;  %p967_p5 = scmp.lt.s32.totalorder %s961_s20, %s961_s20 }
   0xd   :  { %p968_p6 = por %p967_p5, %p966_p4 }
   0xf   :  { %p969_p7 = pnand %p968_p6, %p962_p3 }
  0x11   :  { %972 = shalt.err (!%p969_p7)
}
  0x12   :  { %19 = dma.hbm_to_vmem [thread:$0]  %s1569_s0, 128, %s17_s10, [#allocation3]  }
  0x13   :  { %s973_s25 = scalar_lea.hbm %s1570_s1, 128 }
  0x14   :  { %p974_p8 = scmp.ne.s32.totalorder %s1570_s1, %s973_s25  ;;  %p977_p9 = scmp.lt.u32.totalorder %s973_s25, %s1570_s1 }
  0x16   :  { %p979_p10 = pnand %p977_p9, %p974_p8 }
  0x18   :  { %982 = shalt.err (!%p979_p10)
}
  0x19   :  { %s983_s30 = scalar_lea.vmem %s27_s12, 128  ;;  %p988_p12 = scmp.lt.s32.totalorder %s27_s12, %s27_s12 }
  0x1a   :  { %p984_p11 = scmp.ne.s32.totalorder %s27_s12, %s983_s30  ;;  %p989_p13 = scmp.lt.s32.totalorder %s983_s30, %s983_s30 }
  0x1c   :  { %p990_p0 = por %p989_p13, %p988_p12 }
  0x1e   :  { %p991_p1 = pnand %p990_p0, %p984_p11 }
  0x20   :  { %994 = shalt.err (!%p991_p1)
}
  0x21   :  { %29 = dma.hbm_to_vmem [thread:$0]  %s1570_s1, 128, %s27_s12, [#allocation6]  }
  0x22   :  { %1017 = dma.done.wait [#allocation3], 128  }
  0x23   :  { %1018 = vsyncadd [#allocation3], 4294967168 }
  0x24   :  { %1019 = dma.done.wait [#allocation6], 128  }
  0x25   :  { %1020 = vsyncadd [#allocation6], 4294967168  ;;  %v36_v0 = vlaneseq  ;;  %v1103_v14 = vld [vmem:[#allocation2] ss:$0 sm:$0xff]  ;;  %v1105_v15 = vld [vmem:[#allocation5] ss:$0 sm:$0xff] }
  0x26   :  { %v1107_v16 = vld [vmem:[#allocation2 + $0x1] ss:$0 sm:$0xff]  ;;  %v1112_v17 = vld [vmem:[#allocation5 + $0x1] ss:$0 sm:$0xff]  ;;  %v1117_v18 = vld [vmem:[#allocation2 + $0x2] ss:$0 sm:$0xff] }
  0x27   :  { %v1067_v1 = vshrl.u32 %v36_v0, 7  ;;  %v1119_v19 = vld [vmem:[#allocation5 + $0x2] ss:$0 sm:$0xff]  ;;  %v1125_v24 = vld [vmem:[#allocation2 + $0x3] ss:$0 sm:$0xff]  ;;  %s1025_s1 = smov [#allocation7]  }
  0x28   :  { %v1130_v27 = vld [vmem:[#allocation5 + $0x3] ss:$0 sm:$0xff]  ;;  %v1132_v28 = vld [vmem:[#allocation2 + $0x4] ss:$0 sm:$0xff]  ;;  %v1139_v31 = vld [vmem:[#allocation5 + $0x4] ss:$0 sm:$0xff] }
  0x29   :  { %v38_v2 = vadd.s32 8, %v1067_v1  ;;  %v1071_v3 = vadd.s32 16, %v1067_v1  ;;  %v1074_v4 = vadd.s32 24, %v1067_v1  ;;  %v1077_v5 = vadd.s32 32, %v1067_v1  ;;  %s764_s4 = sshll.u32 %s1025_s1, 4  ;;  %s765_s4 = int_to_ptr.vmem [resolvable:$true] %s764_s4 }
  0x2a   :  { %v1080_v6 = vadd.s32 40, %v1067_v1  ;;  %v1083_v7 = vadd.s32 48, %v1067_v1  ;;  %v1086_v8 = vadd.s32 56, %v1067_v1  ;;  %v1089_v9 = vadd.s32 64, %v1067_v1  ;;  %s995_s5 = scalar_lea.vmem %s765_s4, 2048  ;;  %p1000_p3 = scmp.lt.s32.totalorder %s765_s4, %s765_s4 }
  0x2b   :  { %v1092_v10 = vadd.s32 72, %v1067_v1  ;;  %v1095_v11 = vadd.s32 80, %v1067_v1  ;;  %v1098_v12 = vadd.s32 88, %v1067_v1  ;;  %v1101_v13 = vadd.s32 96, %v1067_v1  ;;  %p996_p2 = scmp.ne.s32.totalorder %s765_s4, %s995_s5  ;;  %p1001_p4 = scmp.lt.s32.totalorder %s995_s5, %s995_s5 }
  0x2c   :  { %vm75_vm0 = vcmp.eq.s32.totalorder %v1067_v1, %v1103_v14  ;;  %vm76_vm1 = vcmp.eq.s32.totalorder %v38_v2, %v1103_v14  ;;  %vm181_vm2 = vcmp.eq.s32.totalorder %v1067_v1, %v1107_v16  ;;  %vm182_vm3 = vcmp.eq.s32.totalorder %v38_v2, %v1107_v16 }
  0x2d   :  { %v111_v20 = vsel %vm75_vm0, %v1105_v15, 0.0  ;;  %v112_v21 = vsel %vm76_vm1, %v1105_v15, 0.0  ;;  %v217_v22 = vsel %vm181_vm2, %v1112_v17, 0.0  ;;  %v218_v23 = vsel %vm182_vm3, %v1112_v17, 0.0  ;;  %p1002_p5 = por %p1001_p4, %p1000_p3 }
  0x2e   :  { %v249_v25 = vadd.f32 %v217_v22, %v111_v20  ;;  %v250_v26 = vadd.f32 %v218_v23, %v112_v21  ;;  %vm287_vm4 = vcmp.eq.s32.totalorder %v1067_v1, %v1117_v18  ;;  %vm288_vm5 = vcmp.eq.s32.totalorder %v38_v2, %v1117_v18 }
  0x2f   :  { %v323_v29 = vsel %vm287_vm4, %v1119_v19, 0.0  ;;  %v324_v30 = vsel %vm288_vm5, %v1119_v19, 0.0  ;;  %vm393_vm6 = vcmp.eq.s32.totalorder %v1067_v1, %v1125_v24  ;;  %vm394_vm7 = vcmp.eq.s32.totalorder %v38_v2, %v1125_v24  ;;  %p1003_p6 = pnand %p1002_p5, %p996_p2 }
  0x30   :  { %v355_v32 = vadd.f32 %v323_v29, %v249_v25  ;;  %v356_v33 = vadd.f32 %v324_v30, %v250_v26  ;;  %v429_v34 = vsel %vm393_vm6, %v1130_v27, 0.0  ;;  %v430_v35 = vsel %vm394_vm7, %v1130_v27, 0.0 }
  0x31   :  { %vm499_vm8 = vcmp.eq.s32.totalorder %v1067_v1, %v1132_v28  ;;  %vm500_vm9 = vcmp.eq.s32.totalorder %v38_v2, %v1132_v28  ;;  %vm77_vm10 = vcmp.eq.s32.totalorder %v1071_v3, %v1103_v14  ;;  %vm78_vm11 = vcmp.eq.s32.totalorder %v1074_v4, %v1103_v14 }
  0x32   :  { %v461_v36 = vadd.f32 %v429_v34, %v355_v32  ;;  %v462_v37 = vadd.f32 %v430_v35, %v356_v33  ;;  %v535_v38 = vsel %vm499_vm8, %v1139_v31, 0.0  ;;  %v536_v39 = vsel %vm500_vm9, %v1139_v31, 0.0 }
  0x33   :  { %v113_v40 = vsel %vm77_vm10, %v1105_v15, 0.0  ;;  %v114_v41 = vsel %vm78_vm11, %v1105_v15, 0.0  ;;  %vm183_vm12 = vcmp.eq.s32.totalorder %v1071_v3, %v1107_v16  ;;  %vm184_vm13 = vcmp.eq.s32.totalorder %v1074_v4, %v1107_v16 }
  0x34   :  { %v567_v42 = vadd.f32 %v535_v38, %v461_v36  ;;  %v568_v43 = vadd.f32 %v536_v39, %v462_v37  ;;  %v219_v44 = vsel %vm183_vm12, %v1112_v17, 0.0  ;;  %v220_v45 = vsel %vm184_vm13, %v1112_v17, 0.0 }
  0x35   :  { %v251_v46 = vadd.f32 %v219_v44, %v113_v40  ;;  %v252_v47 = vadd.f32 %v220_v45, %v114_v41  ;;  %vm289_vm14 = vcmp.eq.s32.totalorder %v1071_v3, %v1117_v18  ;;  %vm290_vm15 = vcmp.eq.s32.totalorder %v1074_v4, %v1117_v18 }
  0x36   :  { %v854_v48 = vpack.c.bf16 %v568_v43, %v567_v42  ;;  %v325_v49 = vsel %vm289_vm14, %v1119_v19, 0.0  ;;  %v326_v50 = vsel %vm290_vm15, %v1119_v19, 0.0  ;;  %vm395_vm0 = vcmp.eq.s32.totalorder %v1071_v3, %v1125_v24 }
  0x37   :  { %v357_v51 = vadd.f32 %v325_v49, %v251_v46  ;;  %v358_v52 = vadd.f32 %v326_v50, %v252_v47  ;;  %vm396_vm1 = vcmp.eq.s32.totalorder %v1074_v4, %v1125_v24  ;;  %v431_v53 = vsel %vm395_vm0, %v1130_v27, 0.0 }
  0x38   :  { %855 = vst [vmem:[#allocation7] sm:$0xff] %v854_v48   ;;  %v432_v54 = vsel %vm396_vm1, %v1130_v27, 0.0  ;;  %vm501_vm2 = vcmp.eq.s32.totalorder %v1071_v3, %v1132_v28  ;;  %vm502_vm3 = vcmp.eq.s32.totalorder %v1074_v4, %v1132_v28  ;;  %vm79_vm4 = vcmp.eq.s32.totalorder %v1077_v5, %v1103_v14 }
  0x39   :  { %v463_v55 = vadd.f32 %v431_v53, %v357_v51  ;;  %v464_v56 = vadd.f32 %v432_v54, %v358_v52  ;;  %v537_v57 = vsel %vm501_vm2, %v1139_v31, 0.0  ;;  %v538_v58 = vsel %vm502_vm3, %v1139_v31, 0.0 }
  0x3a   :  { %vm80_vm5 = vcmp.eq.s32.totalorder %v1080_v6, %v1103_v14  ;;  %v115_v59 = vsel %vm79_vm4, %v1105_v15, 0.0  ;;  %vm185_vm6 = vcmp.eq.s32.totalorder %v1077_v5, %v1107_v16  ;;  %vm186_vm7 = vcmp.eq.s32.totalorder %v1080_v6, %v1107_v16 }
  0x3b   :  { %v569_v60 = vadd.f32 %v537_v57, %v463_v55  ;;  %v570_v61 = vadd.f32 %v538_v58, %v464_v56  ;;  %v116_v62 = vsel %vm80_vm5, %v1105_v15, 0.0  ;;  %v221_v63 = vsel %vm185_vm6, %v1112_v17, 0.0 }
  0x3c   :  { %v222_v0 = vsel %vm186_vm7, %v1112_v17, 0.0  ;;  %v253_v2 = vadd.f32 %v221_v63, %v115_v59  ;;  %vm291_vm8 = vcmp.eq.s32.totalorder %v1077_v5, %v1117_v18  ;;  %vm292_vm9 = vcmp.eq.s32.totalorder %v1080_v6, %v1117_v18 }
  0x3d   :  { %v859_v3 = vpack.c.bf16 %v570_v61, %v569_v60  ;;  %v254_v4 = vadd.f32 %v222_v0, %v116_v62  ;;  %v327_v20 = vsel %vm291_vm8, %v1119_v19, 0.0  ;;  %v328_v21 = vsel %vm292_vm9, %v1119_v19, 0.0 }
  0x3e   :  { %v359_v22 = vadd.f32 %v327_v20, %v253_v2  ;;  %vm397_vm10 = vcmp.eq.s32.totalorder %v1077_v5, %v1125_v24  ;;  %vm398_vm11 = vcmp.eq.s32.totalorder %v1080_v6, %v1125_v24  ;;  %vm503_vm12 = vcmp.eq.s32.totalorder %v1077_v5, %v1132_v28 }
  0x3f   :  { %931 = vst [vmem:[#allocation7 + $0x8] sm:$0xff] %v859_v3   ;;  %v360_v23 = vadd.f32 %v328_v21, %v254_v4  ;;  %v433_v25 = vsel %vm397_vm10, %v1130_v27, 0.0  ;;  %v434_v26 = vsel %vm398_vm11, %v1130_v27, 0.0  ;;  %vm504_vm13 = vcmp.eq.s32.totalorder %v1080_v6, %v1132_v28 }
  0x40   :  { %v465_v29 = vadd.f32 %v433_v25, %v359_v22  ;;  %v539_v30 = vsel %vm503_vm12, %v1139_v31, 0.0  ;;  %v540_v32 = vsel %vm504_vm13, %v1139_v31, 0.0  ;;  %vm81_vm14 = vcmp.eq.s32.totalorder %v1083_v7, %v1103_v14 }
  0x41   :  { %v466_v33 = vadd.f32 %v434_v26, %v360_v23  ;;  %vm82_vm15 = vcmp.eq.s32.totalorder %v1086_v8, %v1103_v14  ;;  %v117_v5 = vsel %vm81_vm14, %v1105_v15, 0.0  ;;  %vm187_vm0 = vcmp.eq.s32.totalorder %v1083_v7, %v1107_v16 }
  0x42   :  { %v571_v34 = vadd.f32 %v539_v30, %v465_v29  ;;  %v118_v6 = vsel %vm82_vm15, %v1105_v15, 0.0  ;;  %vm188_vm1 = vcmp.eq.s32.totalorder %v1086_v8, %v1107_v16  ;;  %v223_v35 = vsel %vm187_vm0, %v1112_v17, 0.0 }
  0x43   :  { %v572_v36 = vadd.f32 %v540_v32, %v466_v33  ;;  %v224_v37 = vsel %vm188_vm1, %v1112_v17, 0.0  ;;  %v255_v38 = vadd.f32 %v223_v35, %v117_v5  ;;  %vm293_vm2 = vcmp.eq.s32.totalorder %v1083_v7, %v1117_v18 }
  0x44   :  { %v256_v39 = vadd.f32 %v224_v37, %v118_v6  ;;  %vm294_vm3 = vcmp.eq.s32.totalorder %v1086_v8, %v1117_v18  ;;  %v329_v40 = vsel %vm293_vm2, %v1119_v19, 0.0  ;;  %vm399_vm4 = vcmp.eq.s32.totalorder %v1083_v7, %v1125_v24 }
  0x45   :  { %v864_v41 = vpack.c.bf16 %v572_v36, %v571_v34  ;;  %v330_v42 = vsel %vm294_vm3, %v1119_v19, 0.0  ;;  %v361_v43 = vadd.f32 %v329_v40, %v255_v38  ;;  %vm400_vm5 = vcmp.eq.s32.totalorder %v1086_v8, %v1125_v24 }
  0x46   :  { %v362_v44 = vadd.f32 %v330_v42, %v256_v39  ;;  %v435_v45 = vsel %vm399_vm4, %v1130_v27, 0.0  ;;  %v436_v46 = vsel %vm400_vm5, %v1130_v27, 0.0  ;;  %vm505_vm6 = vcmp.eq.s32.totalorder %v1083_v7, %v1132_v28 }
  0x47   :  { %932 = vst [vmem:[#allocation7 + $0x10] sm:$0xff] %v864_v41   ;;  %v467_v47 = vadd.f32 %v435_v45, %v361_v43  ;;  %vm506_vm7 = vcmp.eq.s32.totalorder %v1086_v8, %v1132_v28  ;;  %v541_v48 = vsel %vm505_vm6, %v1139_v31, 0.0  ;;  %vm83_vm8 = vcmp.eq.s32.totalorder %v1089_v9, %v1103_v14 }
  0x48   :  { %v468_v49 = vadd.f32 %v436_v46, %v362_v44  ;;  %v542_v50 = vsel %vm506_vm7, %v1139_v31, 0.0  ;;  %vm84_vm9 = vcmp.eq.s32.totalorder %v1092_v10, %v1103_v14  ;;  %v119_v51 = vsel %vm83_vm8, %v1105_v15, 0.0 }
  0x49   :  { %v573_v52 = vadd.f32 %v541_v48, %v467_v47  ;;  %v120_v7 = vsel %vm84_vm9, %v1105_v15, 0.0  ;;  %vm189_vm10 = vcmp.eq.s32.totalorder %v1089_v9, %v1107_v16  ;;  %vm190_vm11 = vcmp.eq.s32.totalorder %v1092_v10, %v1107_v16 }
  0x4a   :  { %v574_v8 = vadd.f32 %v542_v50, %v468_v49  ;;  %v225_v53 = vsel %vm189_vm10, %v1112_v17, 0.0  ;;  %v226_v54 = vsel %vm190_vm11, %v1112_v17, 0.0  ;;  %vm295_vm12 = vcmp.eq.s32.totalorder %v1089_v9, %v1117_v18 }
  0x4b   :  { %v257_v55 = vadd.f32 %v225_v53, %v119_v51  ;;  %v258_v56 = vadd.f32 %v226_v54, %v120_v7  ;;  %vm296_vm13 = vcmp.eq.s32.totalorder %v1092_v10, %v1117_v18  ;;  %v331_v57 = vsel %vm295_vm12, %v1119_v19, 0.0 }
  0x4c   :  { %v869_v58 = vpack.c.bf16 %v574_v8, %v573_v52  ;;  %v332_v59 = vsel %vm296_vm13, %v1119_v19, 0.0  ;;  %vm401_vm14 = vcmp.eq.s32.totalorder %v1089_v9, %v1125_v24  ;;  %vm402_vm15 = vcmp.eq.s32.totalorder %v1092_v10, %v1125_v24 }
  0x4d   :  { %v363_v60 = vadd.f32 %v331_v57, %v257_v55  ;;  %v364_v61 = vadd.f32 %v332_v59, %v258_v56  ;;  %v437_v62 = vsel %vm401_vm14, %v1130_v27, 0.0  ;;  %v438_v63 = vsel %vm402_vm15, %v1130_v27, 0.0 }
  0x4e   :  { %933 = vst [vmem:[#allocation7 + $0x18] sm:$0xff] %v869_v58   ;;  %vm507_vm0 = vcmp.eq.s32.totalorder %v1089_v9, %v1132_v28  ;;  %vm508_vm1 = vcmp.eq.s32.totalorder %v1092_v10, %v1132_v28  ;;  %vm85_vm2 = vcmp.eq.s32.totalorder %v1095_v11, %v1103_v14  ;;  %vm86_vm3 = vcmp.eq.s32.totalorder %v1098_v12, %v1103_v14 }
  0x4f   :  { %v469_v0 = vadd.f32 %v437_v62, %v363_v60  ;;  %v470_v2 = vadd.f32 %v438_v63, %v364_v61  ;;  %v543_v3 = vsel %vm507_vm0, %v1139_v31, 0.0  ;;  %v544_v4 = vsel %vm508_vm1, %v1139_v31, 0.0 }
  0x50   :  { %v121_v20 = vsel %vm85_vm2, %v1105_v15, 0.0  ;;  %v122_v21 = vsel %vm86_vm3, %v1105_v15, 0.0  ;;  %vm191_vm4 = vcmp.eq.s32.totalorder %v1095_v11, %v1107_v16  ;;  %vm192_vm5 = vcmp.eq.s32.totalorder %v1098_v12, %v1107_v16 }
  0x51   :  { %v575_v9 = vadd.f32 %v543_v3, %v469_v0  ;;  %v576_v10 = vadd.f32 %v544_v4, %v470_v2  ;;  %v227_v22 = vsel %vm191_vm4, %v1112_v17, 0.0  ;;  %v228_v23 = vsel %vm192_vm5, %v1112_v17, 0.0 }
  0x52   :  { %v259_v25 = vadd.f32 %v227_v22, %v121_v20  ;;  %v260_v26 = vadd.f32 %v228_v23, %v122_v21  ;;  %vm297_vm6 = vcmp.eq.s32.totalorder %v1095_v11, %v1117_v18  ;;  %vm298_vm7 = vcmp.eq.s32.totalorder %v1098_v12, %v1117_v18 }
  0x53   :  { %v874_v29 = vpack.c.bf16 %v576_v10, %v575_v9  ;;  %v333_v30 = vsel %vm297_vm6, %v1119_v19, 0.0  ;;  %v334_v32 = vsel %vm298_vm7, %v1119_v19, 0.0  ;;  %vm403_vm8 = vcmp.eq.s32.totalorder %v1095_v11, %v1125_v24 }
  0x54   :  { %v365_v33 = vadd.f32 %v333_v30, %v259_v25  ;;  %v366_v5 = vadd.f32 %v334_v32, %v260_v26  ;;  %vm404_vm9 = vcmp.eq.s32.totalorder %v1098_v12, %v1125_v24  ;;  %v439_v34 = vsel %vm403_vm8, %v1130_v27, 0.0 }
  0x55   :  { %934 = vst [vmem:[#allocation7 + $0x20] sm:$0xff] %v874_v29   ;;  %v440_v6 = vsel %vm404_vm9, %v1130_v27, 0.0  ;;  %vm509_vm10 = vcmp.eq.s32.totalorder %v1095_v11, %v1132_v28  ;;  %vm510_vm11 = vcmp.eq.s32.totalorder %v1098_v12, %v1132_v28  ;;  %v50_v35 = vadd.s32 104, %v1067_v1 }
  0x56   :  { %v471_v36 = vadd.f32 %v439_v34, %v365_v33  ;;  %v472_v37 = vadd.f32 %v440_v6, %v366_v5  ;;  %v545_v38 = vsel %vm509_vm10, %v1139_v31, 0.0  ;;  %v546_v39 = vsel %vm510_vm11, %v1139_v31, 0.0 }
  0x57   :  { %vm87_vm12 = vcmp.eq.s32.totalorder %v1101_v13, %v1103_v14  ;;  %vm88_vm13 = vcmp.eq.s32.totalorder %v50_v35, %v1103_v14  ;;  %vm193_vm14 = vcmp.eq.s32.totalorder %v1101_v13, %v1107_v16  ;;  %vm194_vm15 = vcmp.eq.s32.totalorder %v50_v35, %v1107_v16 }
  0x58   :  { %v577_v11 = vadd.f32 %v545_v38, %v471_v36  ;;  %v578_v12 = vadd.f32 %v546_v39, %v472_v37  ;;  %v123_v40 = vsel %vm87_vm12, %v1105_v15, 0.0  ;;  %v124_v41 = vsel %vm88_vm13, %v1105_v15, 0.0 }
  0x59   :  { %v229_v42 = vsel %vm193_vm14, %v1112_v17, 0.0  ;;  %v230_v43 = vsel %vm194_vm15, %v1112_v17, 0.0  ;;  %vm299_vm0 = vcmp.eq.s32.totalorder %v1101_v13, %v1117_v18  ;;  %vm300_vm1 = vcmp.eq.s32.totalorder %v50_v35, %v1117_v18 }
  0x5a   :  { %v879_v44 = vpack.c.bf16 %v578_v12, %v577_v11  ;;  %v261_v45 = vadd.f32 %v229_v42, %v123_v40  ;;  %v262_v46 = vadd.f32 %v230_v43, %v124_v41  ;;  %v335_v47 = vsel %vm299_vm0, %v1119_v19, 0.0 }
  0x5b   :  { %v336_v48 = vsel %vm300_vm1, %v1119_v19, 0.0  ;;  %vm405_vm2 = vcmp.eq.s32.totalorder %v1101_v13, %v1125_v24  ;;  %vm406_vm3 = vcmp.eq.s32.totalorder %v50_v35, %v1125_v24  ;;  %vm511_vm4 = vcmp.eq.s32.totalorder %v1101_v13, %v1132_v28 }
  0x5c   :  { %935 = vst [vmem:[#allocation7 + $0x28] sm:$0xff] %v879_v44   ;;  %v367_v49 = vadd.f32 %v335_v47, %v261_v45  ;;  %v368_v50 = vadd.f32 %v336_v48, %v262_v46  ;;  %v441_v51 = vsel %vm405_vm2, %v1130_v27, 0.0  ;;  %v442_v52 = vsel %vm406_vm3, %v1130_v27, 0.0 }
  0x5d   :  { %vm512_vm5 = vcmp.eq.s32.totalorder %v50_v35, %v1132_v28  ;;  %v547_v7 = vsel %vm511_vm4, %v1139_v31, 0.0  ;;  %v51_v8 = vadd.s32 112, %v1067_v1  ;;  %v52_v53 = vadd.s32 120, %v1067_v1 }
  0x5e   :  { %v473_v54 = vadd.f32 %v441_v51, %v367_v49  ;;  %v474_v55 = vadd.f32 %v442_v52, %v368_v50  ;;  %v548_v56 = vsel %vm512_vm5, %v1139_v31, 0.0  ;;  %v53_v13 = vadd.s32 128, %v1067_v1 }
  0x5f   :  { %vm89_vm6 = vcmp.eq.s32.totalorder %v51_v8, %v1103_v14  ;;  %vm90_vm7 = vcmp.eq.s32.totalorder %v52_v53, %v1103_v14  ;;  %vm195_vm8 = vcmp.eq.s32.totalorder %v51_v8, %v1107_v16  ;;  %vm196_vm9 = vcmp.eq.s32.totalorder %v52_v53, %v1107_v16 }
  0x60   :  { %v579_v57 = vadd.f32 %v547_v7, %v473_v54  ;;  %v580_v58 = vadd.f32 %v548_v56, %v474_v55  ;;  %v125_v59 = vsel %vm89_vm6, %v1105_v15, 0.0  ;;  %v126_v60 = vsel %vm90_vm7, %v1105_v15, 0.0 }
  0x61   :  { %v231_v61 = vsel %vm195_vm8, %v1112_v17, 0.0  ;;  %v232_v62 = vsel %vm196_vm9, %v1112_v17, 0.0  ;;  %vm301_vm10 = vcmp.eq.s32.totalorder %v51_v8, %v1117_v18  ;;  %vm302_vm11 = vcmp.eq.s32.totalorder %v52_v53, %v1117_v18 }
  0x62   :  { %v884_v63 = vpack.c.bf16 %v580_v58, %v579_v57  ;;  %v263_v0 = vadd.f32 %v231_v61, %v125_v59  ;;  %v264_v2 = vadd.f32 %v232_v62, %v126_v60  ;;  %v337_v3 = vsel %vm301_vm10, %v1119_v19, 0.0 }
  0x63   :  { %v338_v4 = vsel %vm302_vm11, %v1119_v19, 0.0  ;;  %vm407_vm12 = vcmp.eq.s32.totalorder %v51_v8, %v1125_v24  ;;  %vm408_vm13 = vcmp.eq.s32.totalorder %v52_v53, %v1125_v24  ;;  %vm513_vm14 = vcmp.eq.s32.totalorder %v51_v8, %v1132_v28 }
  0x64   :  { %936 = vst [vmem:[#allocation7 + $0x30] sm:$0xff] %v884_v63   ;;  %v369_v20 = vadd.f32 %v337_v3, %v263_v0  ;;  %v370_v21 = vadd.f32 %v338_v4, %v264_v2  ;;  %v443_v9 = vsel %vm407_vm12, %v1130_v27, 0.0  ;;  %v444_v10 = vsel %vm408_vm13, %v1130_v27, 0.0 }
  0x65   :  { %vm514_vm15 = vcmp.eq.s32.totalorder %v52_v53, %v1132_v28  ;;  %v549_v22 = vsel %vm513_vm14, %v1139_v31, 0.0  ;;  %v54_v23 = vadd.s32 136, %v1067_v1  ;;  %vm91_vm0 = vcmp.eq.s32.totalorder %v53_v13, %v1103_v14 }
  0x66   :  { %v475_v25 = vadd.f32 %v443_v9, %v369_v20  ;;  %v476_v26 = vadd.f32 %v444_v10, %v370_v21  ;;  %v550_v29 = vsel %vm514_vm15, %v1139_v31, 0.0  ;;  %v127_v30 = vsel %vm91_vm0, %v1105_v15, 0.0 }
  0x67   :  { %vm92_vm1 = vcmp.eq.s32.totalorder %v54_v23, %v1103_v14  ;;  %vm197_vm2 = vcmp.eq.s32.totalorder %v53_v13, %v1107_v16  ;;  %vm198_vm3 = vcmp.eq.s32.totalorder %v54_v23, %v1107_v16  ;;  %vm303_vm4 = vcmp.eq.s32.totalorder %v53_v13, %v1117_v18 }
  0x68   :  { %v581_v32 = vadd.f32 %v549_v22, %v475_v25  ;;  %v582_v33 = vadd.f32 %v550_v29, %v476_v26  ;;  %v128_v5 = vsel %vm92_vm1, %v1105_v15, 0.0  ;;  %v233_v34 = vsel %vm197_vm2, %v1112_v17, 0.0 }
  0x69   :  { %v234_v6 = vsel %vm198_vm3, %v1112_v17, 0.0  ;;  %v265_v35 = vadd.f32 %v233_v34, %v127_v30  ;;  %vm304_vm5 = vcmp.eq.s32.totalorder %v54_v23, %v1117_v18  ;;  %v339_v36 = vsel %vm303_vm4, %v1119_v19, 0.0 }
  0x6a   :  { %v889_v37 = vpack.c.bf16 %v582_v33, %v581_v32  ;;  %v266_v38 = vadd.f32 %v234_v6, %v128_v5  ;;  %v340_v39 = vsel %vm304_vm5, %v1119_v19, 0.0  ;;  %vm409_vm6 = vcmp.eq.s32.totalorder %v53_v13, %v1125_v24 }
  0x6b   :  { %v371_v11 = vadd.f32 %v339_v36, %v265_v35  ;;  %vm410_vm7 = vcmp.eq.s32.totalorder %v54_v23, %v1125_v24  ;;  %v445_v12 = vsel %vm409_vm6, %v1130_v27, 0.0  ;;  %vm515_vm8 = vcmp.eq.s32.totalorder %v53_v13, %v1132_v28 }
  0x6c   :  { %937 = vst [vmem:[#allocation7 + $0x38] sm:$0xff] %v889_v37   ;;  %v372_v40 = vadd.f32 %v340_v39, %v266_v38  ;;  %v446_v41 = vsel %vm410_vm7, %v1130_v27, 0.0  ;;  %vm516_vm9 = vcmp.eq.s32.totalorder %v54_v23, %v1132_v28  ;;  %v551_v42 = vsel %vm515_vm8, %v1139_v31, 0.0 }
  0x6d   :  { %v477_v43 = vadd.f32 %v445_v12, %v371_v11  ;;  %v552_v44 = vsel %vm516_vm9, %v1139_v31, 0.0  ;;  %v55_v45 = vadd.s32 144, %v1067_v1  ;;  %v56_v46 = vadd.s32 152, %v1067_v1 }
  0x6e   :  { %v478_v47 = vadd.f32 %v446_v41, %v372_v40  ;;  %v1371_v48 = vadd.s32 160, %v1067_v1  ;;  %v1374_v49 = vadd.s32 168, %v1067_v1  ;;  %v1377_v50 = vadd.s32 176, %v1067_v1 }
  0x6f   :  { %v583_v51 = vadd.f32 %v551_v42, %v477_v43  ;;  %vm93_vm10 = vcmp.eq.s32.totalorder %v55_v45, %v1103_v14  ;;  %vm94_vm11 = vcmp.eq.s32.totalorder %v56_v46, %v1103_v14  ;;  %vm199_vm12 = vcmp.eq.s32.totalorder %v55_v45, %v1107_v16 }
  0x70   :  { %v584_v52 = vadd.f32 %v552_v44, %v478_v47  ;;  %v129_v7 = vsel %vm93_vm10, %v1105_v15, 0.0  ;;  %v130_v8 = vsel %vm94_vm11, %v1105_v15, 0.0  ;;  %vm200_vm13 = vcmp.eq.s32.totalorder %v56_v46, %v1107_v16 }
  0x71   :  { %v235_v53 = vsel %vm199_vm12, %v1112_v17, 0.0  ;;  %v236_v54 = vsel %vm200_vm13, %v1112_v17, 0.0  ;;  %vm305_vm14 = vcmp.eq.s32.totalorder %v55_v45, %v1117_v18  ;;  %vm306_vm15 = vcmp.eq.s32.totalorder %v56_v46, %v1117_v18 }
  0x72   :  { %v894_v55 = vpack.c.bf16 %v584_v52, %v583_v51  ;;  %v267_v56 = vadd.f32 %v235_v53, %v129_v7  ;;  %v268_v13 = vadd.f32 %v236_v54, %v130_v8  ;;  %v341_v57 = vsel %vm305_vm14, %v1119_v19, 0.0 }
  0x73   :  { %v342_v58 = vsel %vm306_vm15, %v1119_v19, 0.0  ;;  %vm411_vm0 = vcmp.eq.s32.totalorder %v55_v45, %v1125_v24  ;;  %vm412_vm1 = vcmp.eq.s32.totalorder %v56_v46, %v1125_v24  ;;  %vm517_vm2 = vcmp.eq.s32.totalorder %v55_v45, %v1132_v28 }
  0x74   :  { %938 = vst [vmem:[#allocation7 + $0x40] sm:$0xff] %v894_v55   ;;  %v373_v59 = vadd.f32 %v341_v57, %v267_v56  ;;  %v374_v60 = vadd.f32 %v342_v58, %v268_v13  ;;  %v447_v61 = vsel %vm411_vm0, %v1130_v27, 0.0  ;;  %v448_v62 = vsel %vm412_vm1, %v1130_v27, 0.0 }
  0x75   :  { %vm518_vm3 = vcmp.eq.s32.totalorder %v56_v46, %v1132_v28  ;;  %v553_v63 = vsel %vm517_vm2, %v1139_v31, 0.0  ;;  %vm95_vm4 = vcmp.eq.s32.totalorder %v1371_v48, %v1103_v14  ;;  %vm96_vm5 = vcmp.eq.s32.totalorder %v1374_v49, %v1103_v14 }
  0x76   :  { %v479_v0 = vadd.f32 %v447_v61, %v373_v59  ;;  %v480_v2 = vadd.f32 %v448_v62, %v374_v60  ;;  %v554_v3 = vsel %vm518_vm3, %v1139_v31, 0.0  ;;  %v131_v4 = vsel %vm95_vm4, %v1105_v15, 0.0 }
  0x77   :  { %v132_v20 = vsel %vm96_vm5, %v1105_v15, 0.0  ;;  %vm201_vm6 = vcmp.eq.s32.totalorder %v1371_v48, %v1107_v16  ;;  %vm202_vm7 = vcmp.eq.s32.totalorder %v1374_v49, %v1107_v16  ;;  %vm307_vm8 = vcmp.eq.s32.totalorder %v1371_v48, %v1117_v18 }
  0x78   :  { %v585_v21 = vadd.f32 %v553_v63, %v479_v0  ;;  %v586_v9 = vadd.f32 %v554_v3, %v480_v2  ;;  %v237_v10 = vsel %vm201_vm6, %v1112_v17, 0.0  ;;  %v238_v22 = vsel %vm202_vm7, %v1112_v17, 0.0 }
  0x79   :  { %v269_v23 = vadd.f32 %v237_v10, %v131_v4  ;;  %v270_v25 = vadd.f32 %v238_v22, %v132_v20  ;;  %vm308_vm9 = vcmp.eq.s32.totalorder %v1374_v49, %v1117_v18  ;;  %v343_v26 = vsel %vm307_vm8, %v1119_v19, 0.0 }
  0x7a   :  { %v899_v29 = vpack.c.bf16 %v586_v9, %v585_v21  ;;  %v344_v30 = vsel %vm308_vm9, %v1119_v19, 0.0  ;;  %vm413_vm10 = vcmp.eq.s32.totalorder %v1371_v48, %v1125_v24  ;;  %vm414_vm11 = vcmp.eq.s32.totalorder %v1374_v49, %v1125_v24 }
  0x7b   :  { %v375_v32 = vadd.f32 %v343_v26, %v269_v23  ;;  %v376_v33 = vadd.f32 %v344_v30, %v270_v25  ;;  %v449_v5 = vsel %vm413_vm10, %v1130_v27, 0.0  ;;  %v450_v34 = vsel %vm414_vm11, %v1130_v27, 0.0 }
  0x7c   :  { %939 = vst [vmem:[#allocation7 + $0x48] sm:$0xff] %v899_v29   ;;  %vm519_vm12 = vcmp.eq.s32.totalorder %v1371_v48, %v1132_v28  ;;  %vm520_vm13 = vcmp.eq.s32.totalorder %v1374_v49, %v1132_v28  ;;  %v60_v6 = vadd.s32 184, %v1067_v1  ;;  %vm97_vm14 = vcmp.eq.s32.totalorder %v1377_v50, %v1103_v14 }
  0x7d   :  { %v481_v35 = vadd.f32 %v449_v5, %v375_v32  ;;  %v482_v36 = vadd.f32 %v450_v34, %v376_v33  ;;  %v555_v37 = vsel %vm519_vm12, %v1139_v31, 0.0  ;;  %v556_v38 = vsel %vm520_vm13, %v1139_v31, 0.0 }
  0x7e   :  { %vm98_vm15 = vcmp.eq.s32.totalorder %v60_v6, %v1103_v14  ;;  %v133_v39 = vsel %vm97_vm14, %v1105_v15, 0.0  ;;  %vm203_vm0 = vcmp.eq.s32.totalorder %v1377_v50, %v1107_v16  ;;  %vm204_vm1 = vcmp.eq.s32.totalorder %v60_v6, %v1107_v16 }
  0x7f   :  { %v587_v11 = vadd.f32 %v555_v37, %v481_v35  ;;  %v588_v12 = vadd.f32 %v556_v38, %v482_v36  ;;  %v134_v40 = vsel %vm98_vm15, %v1105_v15, 0.0  ;;  %v239_v41 = vsel %vm203_vm0, %v1112_v17, 0.0 }
  0x80   :  { %v240_v42 = vsel %vm204_vm1, %v1112_v17, 0.0  ;;  %v271_v43 = vadd.f32 %v239_v41, %v133_v39  ;;  %vm309_vm2 = vcmp.eq.s32.totalorder %v1377_v50, %v1117_v18  ;;  %vm310_vm3 = vcmp.eq.s32.totalorder %v60_v6, %v1117_v18 }
  0x81   :  { %v904_v44 = vpack.c.bf16 %v588_v12, %v587_v11  ;;  %v272_v45 = vadd.f32 %v240_v42, %v134_v40  ;;  %v345_v46 = vsel %vm309_vm2, %v1119_v19, 0.0  ;;  %v346_v47 = vsel %vm310_vm3, %v1119_v19, 0.0 }
  0x82   :  { %v377_v48 = vadd.f32 %v345_v46, %v271_v43  ;;  %vm415_vm4 = vcmp.eq.s32.totalorder %v1377_v50, %v1125_v24  ;;  %vm416_vm5 = vcmp.eq.s32.totalorder %v60_v6, %v1125_v24  ;;  %vm521_vm6 = vcmp.eq.s32.totalorder %v1377_v50, %v1132_v28 }
  0x83   :  { %940 = vst [vmem:[#allocation7 + $0x50] sm:$0xff] %v904_v44   ;;  %v378_v49 = vadd.f32 %v346_v47, %v272_v45  ;;  %v451_v51 = vsel %vm415_vm4, %v1130_v27, 0.0  ;;  %v452_v52 = vsel %vm416_vm5, %v1130_v27, 0.0  ;;  %vm522_vm7 = vcmp.eq.s32.totalorder %v60_v6, %v1132_v28 }
  0x84   :  { %v483_v7 = vadd.f32 %v451_v51, %v377_v48  ;;  %v557_v8 = vsel %vm521_vm6, %v1139_v31, 0.0  ;;  %v558_v53 = vsel %vm522_vm7, %v1139_v31, 0.0  ;;  %v61_v54 = vadd.s32 192, %v1067_v1 }
  0x85   :  { %v484_v55 = vadd.f32 %v452_v52, %v378_v49  ;;  %v62_v56 = vadd.s32 200, %v1067_v1  ;;  %v1458_v50 = vadd.s32 208, %v1067_v1  ;;  %v1461_v13 = vadd.s32 216, %v1067_v1 }
  0x86   :  { %v589_v57 = vadd.f32 %v557_v8, %v483_v7  ;;  %vm99_vm8 = vcmp.eq.s32.totalorder %v61_v54, %v1103_v14  ;;  %vm205_vm9 = vcmp.eq.s32.totalorder %v61_v54, %v1107_v16  ;;  %vm311_vm10 = vcmp.eq.s32.totalorder %v61_v54, %v1117_v18 }
  0x87   :  { %v590_v58 = vadd.f32 %v558_v53, %v484_v55  ;;  %vm100_vm11 = vcmp.eq.s32.totalorder %v62_v56, %v1103_v14  ;;  %v135_v59 = vsel %vm99_vm8, %v1105_v15, 0.0  ;;  %vm206_vm12 = vcmp.eq.s32.totalorder %v62_v56, %v1107_v16 }
  0x88   :  { %v136_v60 = vsel %vm100_vm11, %v1105_v15, 0.0  ;;  %v241_v61 = vsel %vm205_vm9, %v1112_v17, 0.0  ;;  %v242_v62 = vsel %vm206_vm12, %v1112_v17, 0.0  ;;  %vm312_vm13 = vcmp.eq.s32.totalorder %v62_v56, %v1117_v18 }
  0x89   :  { %v909_v63 = vpack.c.bf16 %v590_v58, %v589_v57  ;;  %v273_v0 = vadd.f32 %v241_v61, %v135_v59  ;;  %v274_v2 = vadd.f32 %v242_v62, %v136_v60  ;;  %v347_v3 = vsel %vm311_vm10, %v1119_v19, 0.0 }
  0x8a   :  { %v348_v4 = vsel %vm312_vm13, %v1119_v19, 0.0  ;;  %vm417_vm14 = vcmp.eq.s32.totalorder %v61_v54, %v1125_v24  ;;  %vm418_vm15 = vcmp.eq.s32.totalorder %v62_v56, %v1125_v24  ;;  %vm523_vm0 = vcmp.eq.s32.totalorder %v61_v54, %v1132_v28 }
  0x8b   :  { %941 = vst [vmem:[#allocation7 + $0x58] sm:$0xff] %v909_v63   ;;  %v379_v20 = vadd.f32 %v347_v3, %v273_v0  ;;  %v380_v21 = vadd.f32 %v348_v4, %v274_v2  ;;  %v453_v9 = vsel %vm417_vm14, %v1130_v27, 0.0  ;;  %v454_v10 = vsel %vm418_vm15, %v1130_v27, 0.0 }
  0x8c   :  { %vm524_vm1 = vcmp.eq.s32.totalorder %v62_v56, %v1132_v28  ;;  %v559_v22 = vsel %vm523_vm0, %v1139_v31, 0.0  ;;  %vm101_vm2 = vcmp.eq.s32.totalorder %v1458_v50, %v1103_v14  ;;  %vm102_vm3 = vcmp.eq.s32.totalorder %v1461_v13, %v1103_v14 }
  0x8d   :  { %v485_v23 = vadd.f32 %v453_v9, %v379_v20  ;;  %v486_v25 = vadd.f32 %v454_v10, %v380_v21  ;;  %v560_v26 = vsel %vm524_vm1, %v1139_v31, 0.0  ;;  %v137_v29 = vsel %vm101_vm2, %v1105_v15, 0.0 }
  0x8e   :  { %v138_v30 = vsel %vm102_vm3, %v1105_v15, 0.0  ;;  %vm207_vm4 = vcmp.eq.s32.totalorder %v1458_v50, %v1107_v16  ;;  %vm208_vm5 = vcmp.eq.s32.totalorder %v1461_v13, %v1107_v16  ;;  %vm313_vm6 = vcmp.eq.s32.totalorder %v1458_v50, %v1117_v18 }
  0x8f   :  { %v591_v32 = vadd.f32 %v559_v22, %v485_v23  ;;  %v592_v33 = vadd.f32 %v560_v26, %v486_v25  ;;  %v243_v5 = vsel %vm207_vm4, %v1112_v17, 0.0  ;;  %v244_v34 = vsel %vm208_vm5, %v1112_v17, 0.0 }
  0x90   :  { %v275_v6 = vadd.f32 %v243_v5, %v137_v29  ;;  %v276_v35 = vadd.f32 %v244_v34, %v138_v30  ;;  %vm314_vm7 = vcmp.eq.s32.totalorder %v1461_v13, %v1117_v18  ;;  %v349_v36 = vsel %vm313_vm6, %v1119_v19, 0.0 }
  0x91   :  { %v914_v37 = vpack.c.bf16 %v592_v33, %v591_v32  ;;  %v350_v38 = vsel %vm314_vm7, %v1119_v19, 0.0  ;;  %vm419_vm8 = vcmp.eq.s32.totalorder %v1458_v50, %v1125_v24  ;;  %vm420_vm9 = vcmp.eq.s32.totalorder %v1461_v13, %v1125_v24 }
  0x92   :  { %v381_v39 = vadd.f32 %v349_v36, %v275_v6  ;;  %v382_v11 = vadd.f32 %v350_v38, %v276_v35  ;;  %v455_v12 = vsel %vm419_vm8, %v1130_v27, 0.0  ;;  %v456_v40 = vsel %vm420_vm9, %v1130_v27, 0.0 }
  0x93   :  { %942 = vst [vmem:[#allocation7 + $0x60] sm:$0xff] %v914_v37   ;;  %vm525_vm10 = vcmp.eq.s32.totalorder %v1458_v50, %v1132_v28  ;;  %vm526_vm11 = vcmp.eq.s32.totalorder %v1461_v13, %v1132_v28  ;;  %v65_v41 = vadd.s32 224, %v1067_v1  ;;  %v66_v42 = vadd.s32 232, %v1067_v1 }
  0x94   :  { %v487_v43 = vadd.f32 %v455_v12, %v381_v39  ;;  %v488_v44 = vadd.f32 %v456_v40, %v382_v11  ;;  %v561_v45 = vsel %vm525_vm10, %v1139_v31, 0.0  ;;  %v562_v46 = vsel %vm526_vm11, %v1139_v31, 0.0 }
  0x95   :  { %vm103_vm12 = vcmp.eq.s32.totalorder %v65_v41, %v1103_v14  ;;  %vm104_vm13 = vcmp.eq.s32.totalorder %v66_v42, %v1103_v14  ;;  %vm209_vm14 = vcmp.eq.s32.totalorder %v65_v41, %v1107_v16  ;;  %vm210_vm15 = vcmp.eq.s32.totalorder %v66_v42, %v1107_v16 }
  0x96   :  { %v593_v47 = vadd.f32 %v561_v45, %v487_v43  ;;  %v594_v48 = vadd.f32 %v562_v46, %v488_v44  ;;  %v139_v49 = vsel %vm103_vm12, %v1105_v15, 0.0  ;;  %v140_v51 = vsel %vm104_vm13, %v1105_v15, 0.0 }
  0x97   :  { %v245_v52 = vsel %vm209_vm14, %v1112_v17, 0.0  ;;  %v246_v7 = vsel %vm210_vm15, %v1112_v17, 0.0  ;;  %vm315_vm0 = vcmp.eq.s32.totalorder %v65_v41, %v1117_v18  ;;  %vm316_vm1 = vcmp.eq.s32.totalorder %v66_v42, %v1117_v18 }
  0x98   :  { %v919_v8 = vpack.c.bf16 %v594_v48, %v593_v47  ;;  %v277_v53 = vadd.f32 %v245_v52, %v139_v49  ;;  %v278_v54 = vadd.f32 %v246_v7, %v140_v51  ;;  %v351_v55 = vsel %vm315_vm0, %v1119_v19, 0.0 }
  0x99   :  { %v352_v56 = vsel %vm316_vm1, %v1119_v19, 0.0  ;;  %vm421_vm2 = vcmp.eq.s32.totalorder %v65_v41, %v1125_v24  ;;  %vm422_vm3 = vcmp.eq.s32.totalorder %v66_v42, %v1125_v24  ;;  %vm527_vm4 = vcmp.eq.s32.totalorder %v65_v41, %v1132_v28 }
  0x9a   :  { %943 = vst [vmem:[#allocation7 + $0x68] sm:$0xff] %v919_v8   ;;  %v383_v50 = vadd.f32 %v351_v55, %v277_v53  ;;  %v384_v13 = vadd.f32 %v352_v56, %v278_v54  ;;  %v457_v57 = vsel %vm421_vm2, %v1130_v27, 0.0  ;;  %v458_v58 = vsel %vm422_vm3, %v1130_v27, 0.0 }
  0x9b   :  { %vm528_vm5 = vcmp.eq.s32.totalorder %v66_v42, %v1132_v28  ;;  %v563_v59 = vsel %vm527_vm4, %v1139_v31, 0.0  ;;  %v67_v60 = vadd.s32 240, %v1067_v1  ;;  %v68_v61 = vadd.s32 248, %v1067_v1 }
  0x9c   :  { %v489_v62 = vadd.f32 %v457_v57, %v383_v50  ;;  %v490_v63 = vadd.f32 %v458_v58, %v384_v13  ;;  %v564_v0 = vsel %vm528_vm5, %v1139_v31, 0.0 }
  0x9d   :  { %vm105_vm6 = vcmp.eq.s32.totalorder %v67_v60, %v1103_v14  ;;  %vm106_vm7 = vcmp.eq.s32.totalorder %v68_v61, %v1103_v14  ;;  %vm211_vm8 = vcmp.eq.s32.totalorder %v67_v60, %v1107_v16  ;;  %vm212_vm9 = vcmp.eq.s32.totalorder %v68_v61, %v1107_v16 }
  0x9e   :  { %v595_v2 = vadd.f32 %v563_v59, %v489_v62  ;;  %v596_v3 = vadd.f32 %v564_v0, %v490_v63  ;;  %v141_v4 = vsel %vm105_vm6, %v1105_v15, 0.0  ;;  %v142_v20 = vsel %vm106_vm7, %v1105_v15, 0.0 }
  0x9f   :  { %v247_v1 = vsel %vm211_vm8, %v1112_v17, 0.0  ;;  %v248_v21 = vsel %vm212_vm9, %v1112_v17, 0.0  ;;  %vm317_vm10 = vcmp.eq.s32.totalorder %v67_v60, %v1117_v18  ;;  %vm318_vm11 = vcmp.eq.s32.totalorder %v68_v61, %v1117_v18 }
  0xa0   :  { %v924_v9 = vpack.c.bf16 %v596_v3, %v595_v2  ;;  %v279_v14 = vadd.f32 %v247_v1, %v141_v4  ;;  %v280_v10 = vadd.f32 %v248_v21, %v142_v20  ;;  %v353_v22 = vsel %vm317_vm10, %v1119_v19, 0.0 }
  0xa1   :  { %v354_v16 = vsel %vm318_vm11, %v1119_v19, 0.0  ;;  %vm423_vm12 = vcmp.eq.s32.totalorder %v67_v60, %v1125_v24  ;;  %vm424_vm13 = vcmp.eq.s32.totalorder %v68_v61, %v1125_v24  ;;  %vm529_vm14 = vcmp.eq.s32.totalorder %v67_v60, %v1132_v28 }
  0xa2   :  { %944 = vst [vmem:[#allocation7 + $0x70] sm:$0xff] %v924_v9   ;;  %v385_v15 = vadd.f32 %v353_v22, %v279_v14  ;;  %v386_v17 = vadd.f32 %v354_v16, %v280_v10  ;;  %v459_v23 = vsel %vm423_vm12, %v1130_v27, 0.0  ;;  %v460_v18 = vsel %vm424_vm13, %v1130_v27, 0.0 }
  0xa3   :  { %vm530_vm15 = vcmp.eq.s32.totalorder %v68_v61, %v1132_v28  ;;  %v565_v25 = vsel %vm529_vm14, %v1139_v31, 0.0 }
  0xa4   :  { %v491_v26 = vadd.f32 %v459_v23, %v385_v15  ;;  %v492_v29 = vadd.f32 %v460_v18, %v386_v17  ;;  %v566_v19 = vsel %vm530_vm15, %v1139_v31, 0.0 }
  0xa6   :  { %v597_v24 = vadd.f32 %v565_v25, %v491_v26  ;;  %v598_v30 = vadd.f32 %v566_v19, %v492_v29 }
  0xa8   :  { %v929_v32 = vpack.c.bf16 %v598_v30, %v597_v24 }
  0xaa   :  { %945 = vst [vmem:[#allocation7 + $0x78] sm:$0xff] %v929_v32  }
  0xab   :  { %1006 = shalt.err (!%p1003_p6)
}
  0xac   :  { %s1007_s8 = scalar_lea.hbm %s1571_s2, 2048 }
  0xad   :  { %p1008_p7 = scmp.ne.s32.totalorder %s1571_s2, %s1007_s8  ;;  %p1011_p8 = scmp.lt.u32.totalorder %s1007_s8, %s1571_s2 }
  0xaf   :  { %p1013_p9 = pnand %p1011_p8, %p1008_p7 }
  0xb1   :  { %1016 = shalt.err (!%p1013_p9)
}
  0xb2   :  { %s1026_s13 = smov 64   ;;  %s1027_s14 = smov 4  }
  0xb3   :  { %770 = dma.vmem_to_hbm [thread:$0]  %s765_s4, 2048, %s1571_s2, [#allocation4], %s1026_s13, %s1026_s13, %s1027_s14  }
  0xb4   :  { %1021 = dma.done.wait [#allocation4], 2048  }
  0xb5   :  { %1022 = vsyncadd [#allocation4], 4294965248 }
  0xb6   :  { %774 = vsyncpa [#allocation3], 1 }
  0xb7   :  { %775 = vsyncpa [#allocation6], 1 }
  0xb8   :  { %776 = vsyncpa [#allocation4], 1 }

</bundles_post_ra>
